<compile_context>
chip_gen: v7x
topology: tpu7x:2x2x1
jax: 0.10.0
libtpu: 0.0.40
codegen_flags: <defaults>
</compile_context>

<pallas_src>
import functools

import jax
import jax.numpy as jnp
from jax.experimental import pallas as pl
from jax.experimental.pallas import tpu as pltpu


def _output_layer_kernel(x_ref, w1_ref, b1_ref, gamma_ref, beta_ref,
                         w2_ref, b2_ref, w3_ref, b3_ref, out_ref,
                         *, c, unroll):
    # Blocks per grid step:
    #   x_ref   (bt, c*T, n)   nodes in lanes, GLU residual folded into w1
    #   out_ref (1, bt, n)     lane-dense output slab
    bt = x_ref.shape[0]
    n = x_ref.shape[2]
    inv_count = 1.0 / float(n * c)

    # Small weights / affine params: load once per grid step, reuse over bt.
    w1 = w1_ref[...]                          # (2c, cT), residual folded in
    b1 = b1_ref[...].astype(jnp.float32)      # (2c, 1)
    gamma = gamma_ref[...]                    # (c, n)
    beta = beta_ref[...]                      # (c, n)
    w2 = w2_ref[...]                          # (c, c)
    b2 = b2_ref[...].astype(jnp.float32)      # (c, 1)
    w3 = w3_ref[...].astype(jnp.float32)      # (c, 1) column
    b3 = b3_ref[...].astype(jnp.float32)      # (1, 1)

    def one_batch(bb, carry):
        x = x_ref[bb]                                                   # (cT, n)

        # ---- tconv1 (GLU, kt=T): one fused matmul, f32 accumulation ----
        pq = jnp.dot(w1, x, preferred_element_type=jnp.float32) + b1   # (2c, n)
        glu = pq[:c] * jax.nn.sigmoid(pq[c:])                          # (c, n)

        # ---- LayerNorm([n, c]): joint per-batch stats, two-pass (stable) ----
        mean = jnp.sum(glu) * inv_count
        diff = glu - mean
        var = jnp.sum(diff * diff) * inv_count
        normed = diff * jax.lax.rsqrt(var + 1e-5) * gamma + beta       # (c, n)

        # ---- tconv2 (sigmoid, kt=1): 1x1 conv + residual ----
        y2 = jax.nn.sigmoid(
            jnp.dot(w2, normed.astype(w2.dtype),
                    preferred_element_type=jnp.float32) + b2 + normed)  # (c, n)

        # ---- fc: per-channel scale + sublane reduce (VPU/XLU; no M=1 MXU op) ----
        row = jnp.sum(w3 * y2, axis=0, keepdims=True) + b3             # (1, n)
        out_ref[0, pl.ds(bb, 1), :] = row
        return carry

    jax.lax.fori_loop(0, bt, one_batch, 0, unroll=unroll)


def _pick_bt(B, bytes_per_batch, blk_budget):
    """Largest divisor of B whose double-buffered block fits the VMEM budget,
    preferring an even grid step count >= 2 (v7x shards 'parallel' over 2 TCs)."""
    divisors = sorted((d for d in range(1, B + 1) if B % d == 0), reverse=True)
    fitting = [d for d in divisors if 2 * d * bytes_per_batch <= blk_budget]
    if not fitting:
        return 1
    for bt in fitting:
        steps = B // bt
        if steps >= 2 and steps % 2 == 0:
            return bt
    return fitting[0]


def output_layer_pallas(x, params, *, bt=None, use_bf16=True):
    """x: NCHW (B, c, T, n). Returns (B, 1, 1, n) like the PyTorch module.

    use_bf16=True keeps the dominant x HBM stream and MXU operands in bf16 with
    f32 accumulation and f32 elementwise math (in a full model the cast fuses
    into the producing layer). Pass use_bf16=False for exact-f32 inputs.
    """
    B, c, T, n = x.shape
    cT = c * T
    compute_dtype = jnp.bfloat16 if use_bf16 else jnp.float32

    # ---- layout plumbing: pure views only (no HBM transposes / pads of x) ----
    x_feat = x.reshape(B, cT, n).astype(compute_dtype)     # rows = ci*T + t

    # Fold the GLU residual into the conv weight:
    #   p + x[:, :, T-1, :] == (W1a + S) @ x_flat + b1a,   S[ci, ci*T+T-1] = 1.
    W1 = params["W1"].reshape(2 * c, cT)
    rows = jnp.arange(c)
    w1 = W1.at[rows, rows * T + (T - 1)].add(1.0).astype(compute_dtype)
    b1 = params["B1"].reshape(2 * c, 1)
    gammaT = jnp.transpose(params["gamma"])                # (c, n)
    betaT = jnp.transpose(params["beta"])                  # (c, n)
    w2 = params["W2"].reshape(c, c).astype(compute_dtype)
    b2 = params["B2"].reshape(c, 1)
    w3 = params["W3"].reshape(1, c).T                      # (c, 1) column (f32)
    b3 = params["B3"].reshape(1, 1)

    # ---- batch tiling: bt divides B (no pad copy), even step count preferred ----
    x_item = jnp.dtype(compute_dtype).itemsize
    bytes_per_batch = cT * n * x_item + n * 4
    w_bytes = (2 * c * cT * x_item + c * c * x_item
               + (2 * c + 2 * c * n + c + c + 1) * 4)
    try:
        phys_vmem = int(getattr(pltpu.get_tpu_info(), "vmem_capacity_bytes",
                                64 * 2 ** 20))
    except Exception:
        phys_vmem = 64 * 2 ** 20
    vmem_cap = (3 * phys_vmem) // 4          # <= 75% of physical: v7x headroom
    blk_budget = max(2 * 2 ** 20, vmem_cap - 2 * w_bytes - 8 * 2 ** 20)
    if bt is None:
        bt = _pick_bt(B, bytes_per_batch, blk_budget)
    assert B % bt == 0, f"bt={bt} must divide B={B} (avoids an HBM pad copy)"
    n_steps = B // bt

    vmem_need = 2 * bt * bytes_per_batch + 2 * w_bytes
    vmem_limit = int(min(vmem_cap, max(16 * 2 ** 20, 4 * vmem_need)))

    # Cap unroll so live (c, n) f32 tiles don't blow the 64-vreg file.
    unroll = bt if c * n * 4 <= 32 * 1024 else min(bt, 2)

    cost = pl.CostEstimate(
        flops=int(B * n * (4 * c * cT + 2 * c * c + 4 * c)),
        transcendentals=int(2 * B * c * n),
        bytes_accessed=int(B * cT * n * x_item + B * n * 4 + w_bytes),
    )

    def _bcast(shape):
        nd = len(shape)
        return pl.BlockSpec(shape, lambda i, _nd=nd: (0,) * _nd)

    kernel = functools.partial(_output_layer_kernel, c=c, unroll=unroll)

    out = pl.pallas_call(
        kernel,
        out_shape=jax.ShapeDtypeStruct((n_steps, bt, n), jnp.float32),
        grid_spec=pltpu.PrefetchScalarGridSpec(
            num_scalar_prefetch=0,
            grid=(n_steps,),
            in_specs=[
                pl.BlockSpec((bt, cT, n), lambda i: (i, 0, 0)),
                _bcast((2 * c, cT)),
                _bcast((2 * c, 1)),
                _bcast((c, n)),
                _bcast((c, n)),
                _bcast((c, c)),
                _bcast((c, 1)),
                _bcast((c, 1)),
                _bcast((1, 1)),
            ],
            out_specs=pl.BlockSpec((1, bt, n), lambda i: (i, 0, 0)),
        ),
        compiler_params=pltpu.CompilerParams(
            dimension_semantics=("parallel",),
            vmem_limit_bytes=vmem_limit,
        ),
        cost_estimate=cost,
    )(x_feat, w1, b1, gammaT, betaT, w2, b2, w3, b3)

    # (n_steps, bt, n) is already in PyTorch node order; merge to (B, 1, 1, n).
    return out.reshape(B, 1, 1, n)


def output_layer_ref(x, params):
    """Plain-JAX reference (mirrors the PyTorch forward) for correctness checks."""
    B, c, T, n = x.shape
    hi = jax.lax.Precision.HIGHEST
    W1 = params["W1"].reshape(2 * c, c * T)
    xf = jnp.transpose(x, (0, 3, 1, 2)).reshape(B, n, c * T)            # (B, n, cT)
    s = jnp.matmul(xf, W1.T, precision=hi) + params["B1"]               # (B, n, 2c)
    x_last = jnp.transpose(x[:, :, T - 1, :], (0, 2, 1))                # (B, n, c)
    glu = (s[..., :c] + x_last) * jax.nn.sigmoid(s[..., c:])            # (B, n, c)
    mean = jnp.mean(glu, axis=(1, 2), keepdims=True)
    var = jnp.mean((glu - mean) ** 2, axis=(1, 2), keepdims=True)
    normed = (glu - mean) / jnp.sqrt(var + 1e-5) * params["gamma"] + params["beta"]
    W2 = params["W2"].reshape(c, c)
    y2 = jax.nn.sigmoid(jnp.matmul(normed, W2.T, precision=hi)
                        + params["B2"] + normed)
    W3 = params["W3"].reshape(1, c)
    out = jnp.matmul(y2, W3.T, precision=hi) + params["B3"]             # (B, n, 1)
    return jnp.transpose(out, (0, 2, 1)).reshape(B, 1, 1, n)


def make_params(key, c, T, n):
    """Parameters in PyTorch-native layouts (Conv2d weights, LayerNorm affine)."""
    ks = jax.random.split(key, 8)
    scale = 0.1
    return {
        "W1": scale * jax.random.normal(ks[0], (2 * c, c, T, 1), jnp.float32),
        "B1": scale * jax.random.normal(ks[1], (2 * c,), jnp.float32),
        "gamma": 1.0 + scale * jax.random.normal(ks[2], (n, c), jnp.float32),
        "beta": scale * jax.random.normal(ks[3], (n, c), jnp.float32),
        "W2": scale * jax.random.normal(ks[4], (c, c, 1, 1), jnp.float32),
        "B2": scale * jax.random.normal(ks[5], (c,), jnp.float32),
        "W3": scale * jax.random.normal(ks[6], (1, c, 1, 1), jnp.float32),
        "B3": scale * jax.random.normal(ks[7], (1,), jnp.float32),
    }


if __name__ == "__main__":
    B, c, T, n = 2, 4, 8, 16
    key = jax.random.PRNGKey(0)
    kx, kp = jax.random.split(key)
    x = jax.random.normal(kx, (B, c, T, n), jnp.float32)  # NCHW: (batch, ch, time, nodes)
    params = make_params(kp, c, T, n)

    ref = jax.block_until_ready(output_layer_ref(x, params))

    # Exact-f32 path: tight-ish check against the plain-JAX reference.
    fwd_f32 = jax.jit(functools.partial(output_layer_pallas, use_bf16=False))
    out_f32 = jax.block_until_ready(fwd_f32(x, params))
    assert out_f32.shape == (B, 1, 1, n), out_f32.shape
    err_f32 = float(jnp.max(jnp.abs(out_f32 - ref)))
    assert jnp.allclose(out_f32, ref, rtol=2e-3, atol=2e-3), err_f32

    # Default bf16-stream path: loose tolerance (bf16 MXU operands, f32 accumulation).
    fwd_bf16 = jax.jit(output_layer_pallas)
    out_bf16 = jax.block_until_ready(fwd_bf16(x, params))
    assert out_bf16.shape == (B, 1, 1, n), out_bf16.shape
    err_bf16 = float(jnp.max(jnp.abs(out_bf16 - ref)))
    assert jnp.allclose(out_bf16, ref, rtol=5e-2, atol=5e-2), err_bf16

    print("KERNEL_OK")
</pallas_src>

<mosaic_0001>
module attributes {stable_mosaic.version = 11 : i64} {
  func.func @_output_layer_kernel(%arg0: i32, %arg1: memref<1x32x16xf32, #tpu.memory_space<vmem>>, %arg2: memref<8x32xf32, #tpu.memory_space<vmem>>, %arg3: memref<8x1xf32, #tpu.memory_space<vmem>>, %arg4: memref<4x16xf32, #tpu.memory_space<vmem>>, %arg5: memref<4x16xf32, #tpu.memory_space<vmem>>, %arg6: memref<4x4xf32, #tpu.memory_space<vmem>>, %arg7: memref<4x1xf32, #tpu.memory_space<vmem>>, %arg8: memref<4x1xf32, #tpu.memory_space<vmem>>, %arg9: memref<1x1xf32, #tpu.memory_space<vmem>>, %arg10: memref<1x1x16xf32, #tpu.memory_space<vmem>>) attributes {dimension_semantics = [#tpu.dimension_semantics<parallel>], iteration_bounds = array<i64: 2>, scalar_prefetch = 0 : i64, scratch_operands = 0 : i64, tpu.core_type = #tpu.core_type<tc>, window_params = [{transform_indices = @transform_0, window_bounds = array<i64: 1, 32, 16>}, {pipeline_mode = #tpu.pipeline_mode<synchronous>, transform_indices = @transform_1, window_bounds = array<i64: 8, 32>}, {pipeline_mode = #tpu.pipeline_mode<synchronous>, transform_indices = @transform_2, window_bounds = array<i64: 8, 1>}, {pipeline_mode = #tpu.pipeline_mode<synchronous>, transform_indices = @transform_3, window_bounds = array<i64: 4, 16>}, {pipeline_mode = #tpu.pipeline_mode<synchronous>, transform_indices = @transform_4, window_bounds = array<i64: 4, 16>}, {pipeline_mode = #tpu.pipeline_mode<synchronous>, transform_indices = @transform_5, window_bounds = array<i64: 4, 4>}, {pipeline_mode = #tpu.pipeline_mode<synchronous>, transform_indices = @transform_6, window_bounds = array<i64: 4, 1>}, {pipeline_mode = #tpu.pipeline_mode<synchronous>, transform_indices = @transform_7, window_bounds = array<i64: 4, 1>}, {pipeline_mode = #tpu.pipeline_mode<synchronous>, transform_indices = @transform_8, window_bounds = array<i64: 1, 1>}, {transform_indices = @transform_9, window_bounds = array<i64: 1, 1, 16>}]} {
    %c0 = arith.constant 0 : index
    %c0_0 = arith.constant 0 : index
    %0 = vector.load %arg2[%c0, %c0_0] : memref<8x32xf32, #tpu.memory_space<vmem>>, vector<8x32xf32>
    %c0_1 = arith.constant 0 : index
    %c0_2 = arith.constant 0 : index
    %1 = vector.load %arg3[%c0_1, %c0_2] : memref<8x1xf32, #tpu.memory_space<vmem>>, vector<8x1xf32>
    %c0_3 = arith.constant 0 : index
    %c0_4 = arith.constant 0 : index
    %2 = vector.load %arg4[%c0_3, %c0_4] : memref<4x16xf32, #tpu.memory_space<vmem>>, vector<4x16xf32>
    %c0_5 = arith.constant 0 : index
    %c0_6 = arith.constant 0 : index
    %3 = vector.load %arg5[%c0_5, %c0_6] : memref<4x16xf32, #tpu.memory_space<vmem>>, vector<4x16xf32>
    %c0_7 = arith.constant 0 : index
    %c0_8 = arith.constant 0 : index
    %4 = vector.load %arg6[%c0_7, %c0_8] : memref<4x4xf32, #tpu.memory_space<vmem>>, vector<4x4xf32>
    %c0_9 = arith.constant 0 : index
    %c0_10 = arith.constant 0 : index
    %5 = vector.load %arg7[%c0_9, %c0_10] : memref<4x1xf32, #tpu.memory_space<vmem>>, vector<4x1xf32>
    %c0_11 = arith.constant 0 : index
    %c0_12 = arith.constant 0 : index
    %6 = vector.load %arg8[%c0_11, %c0_12] : memref<4x1xf32, #tpu.memory_space<vmem>>, vector<4x1xf32>
    %c0_13 = arith.constant 0 : index
    %c0_14 = arith.constant 0 : index
    %7 = vector.load %arg9[%c0_13, %c0_14] : memref<1x1xf32, #tpu.memory_space<vmem>>, vector<1x1xf32>
    %c0_i32 = arith.constant 0 : i32
    %8 = arith.index_cast %c0_i32 : i32 to index
    %c0_15 = arith.constant 0 : index
    %c0_16 = arith.constant 0 : index
    %9 = vector.load %arg1[%8, %c0_15, %c0_16] : memref<1x32x16xf32, #tpu.memory_space<vmem>>, vector<1x32x16xf32>
    %10 = vector.shape_cast %9 : vector<1x32x16xf32> to vector<32x16xf32>
    %cst = arith.constant dense<0.000000e+00> : vector<8x16xf32>
    %11 = tpu.matmul %0, %10, %cst {dimension_numbers = #tpu.dot_dimension_numbers<[1], [0], [0], [1], [0, 0, 1, 1], [], []>} : vector<8x32xf32>, vector<32x16xf32>, vector<8x16xf32> -> vector<8x16xf32>
    %12 = vector.broadcast %1 : vector<8x1xf32> to vector<8x16xf32>
    %13 = arith.addf %11, %12 : vector<8x16xf32>
    %14 = vector.extract_strided_slice %13 {offsets = [0, 0], sizes = [4, 16], strides = [1, 1]} : vector<8x16xf32> to vector<4x16xf32>
    %15 = vector.extract_strided_slice %13 {offsets = [4, 0], sizes = [4, 16], strides = [1, 1]} : vector<8x16xf32> to vector<4x16xf32>
    %16 = arith.negf %15 : vector<4x16xf32>
    %17 = math.exp %16 : vector<4x16xf32>
    %cst_17 = arith.constant 1.000000e+00 : f32
    %18 = vector.broadcast %cst_17 : f32 to vector<4x16xf32>
    %19 = arith.addf %18, %17 : vector<4x16xf32>
    %20 = arith.divf %18, %19 : vector<4x16xf32>
    %21 = arith.mulf %14, %20 : vector<4x16xf32>
    %22 = vector.shape_cast %21 : vector<4x16xf32> to vector<1x4x16xf32>
    %cst_18 = arith.constant dense<0.000000e+00> : vector<1xf32>
    %23 = vector.multi_reduction <add>, %22, %cst_18 [1, 2] : vector<1x4x16xf32> to vector<1xf32>
    %24 = vector.shape_cast %23 : vector<1xf32> to vector<1x1x1xf32>
    %25 = vector.extract %24[0, 0, 0] : f32 from vector<1x1x1xf32>
    %cst_19 = arith.constant 1.562500e-02 : f32
    %26 = arith.mulf %25, %cst_19 : f32
    %27 = vector.broadcast %26 : f32 to vector<4x16xf32>
    %28 = arith.subf %21, %27 : vector<4x16xf32>
    %29 = arith.mulf %28, %28 : vector<4x16xf32>
    %30 = vector.shape_cast %29 : vector<4x16xf32> to vector<1x4x16xf32>
    %cst_20 = arith.constant dense<0.000000e+00> : vector<1xf32>
    %31 = vector.multi_reduction <add>, %30, %cst_20 [1, 2] : vector<1x4x16xf32> to vector<1xf32>
    %32 = vector.shape_cast %31 : vector<1xf32> to vector<1x1x1xf32>
    %33 = vector.extract %32[0, 0, 0] : f32 from vector<1x1x1xf32>
    %cst_21 = arith.constant 1.562500e-02 : f32
    %34 = arith.mulf %33, %cst_21 : f32
    %cst_22 = arith.constant 9.99999974E-6 : f32
    %35 = arith.addf %34, %cst_22 : f32
    %36 = math.rsqrt %35 : f32
    %37 = vector.broadcast %36 : f32 to vector<4x16xf32>
    %38 = arith.mulf %28, %37 : vector<4x16xf32>
    %39 = arith.mulf %38, %2 : vector<4x16xf32>
    %40 = arith.addf %39, %3 : vector<4x16xf32>
    %cst_23 = arith.constant dense<0.000000e+00> : vector<4x16xf32>
    %41 = tpu.matmul %4, %40, %cst_23 {dimension_numbers = #tpu.dot_dimension_numbers<[1], [0], [0], [1], [0, 0, 1, 1], [], []>} : vector<4x4xf32>, vector<4x16xf32>, vector<4x16xf32> -> vector<4x16xf32>
    %42 = vector.broadcast %5 : vector<4x1xf32> to vector<4x16xf32>
    %43 = arith.addf %41, %42 : vector<4x16xf32>
    %44 = arith.addf %43, %40 : vector<4x16xf32>
    %45 = arith.negf %44 : vector<4x16xf32>
    %46 = math.exp %45 : vector<4x16xf32>
    %cst_24 = arith.constant 1.000000e+00 : f32
    %47 = vector.broadcast %cst_24 : f32 to vector<4x16xf32>
    %48 = arith.addf %47, %46 : vector<4x16xf32>
    %49 = arith.divf %47, %48 : vector<4x16xf32>
    %50 = vector.broadcast %6 : vector<4x1xf32> to vector<4x16xf32>
    %51 = arith.mulf %50, %49 : vector<4x16xf32>
    %cst_25 = arith.constant dense<0.000000e+00> : vector<16xf32>
    %52 = vector.multi_reduction <add>, %51, %cst_25 [0] : vector<4x16xf32> to vector<16xf32>
    %53 = vector.shape_cast %52 : vector<16xf32> to vector<1x16xf32>
    %54 = vector.broadcast %7 : vector<1x1xf32> to vector<1x16xf32>
    %55 = arith.addf %53, %54 : vector<1x16xf32>
    %c0_26 = arith.constant 0 : index
    %56 = arith.index_cast %c0_i32 : i32 to index
    %c0_27 = arith.constant 0 : index
    %57 = vector.load %arg10[%c0_26, %56, %c0_27] : memref<1x1x16xf32, #tpu.memory_space<vmem>>, vector<1x1x16xf32>
    %58 = vector.shape_cast %57 : vector<1x1x16xf32> to vector<1x16xf32>
    %59 = vector.shape_cast %55 : vector<1x16xf32> to vector<1x1x16xf32>
    tpu.vector_store %arg10[%c0_26, %56, %c0_27], %59 {strides = array<i32>} : memref<1x1x16xf32, #tpu.memory_space<vmem>>, vector<1x1x16xf32>,
    %c1_i32 = arith.constant 1 : i32
    return
  }
  func.func @transform_0(%arg0: i32) -> (i32, i32, i32) {
    %c0_i32 = arith.constant 0 : i32
    %c0_i32_0 = arith.constant 0 : i32
    %c0_i32_1 = arith.constant 0 : i32
    return %arg0, %c0_i32, %c0_i32_0 : i32, i32, i32
  }
  func.func @transform_1(%arg0: i32) -> (i32, i32) {
    %c0_i32 = arith.constant 0 : i32
    %c0_i32_0 = arith.constant 0 : i32
    %c0_i32_1 = arith.constant 0 : i32
    return %c0_i32, %c0_i32_0 : i32, i32
  }
  func.func @transform_2(%arg0: i32) -> (i32, i32) {
    %c0_i32 = arith.constant 0 : i32
    %c0_i32_0 = arith.constant 0 : i32
    %c0_i32_1 = arith.constant 0 : i32
    return %c0_i32, %c0_i32_0 : i32, i32
  }
  func.func @transform_3(%arg0: i32) -> (i32, i32) {
    %c0_i32 = arith.constant 0 : i32
    %c0_i32_0 = arith.constant 0 : i32
    %c0_i32_1 = arith.constant 0 : i32
    return %c0_i32, %c0_i32_0 : i32, i32
  }
  func.func @transform_4(%arg0: i32) -> (i32, i32) {
    %c0_i32 = arith.constant 0 : i32
    %c0_i32_0 = arith.constant 0 : i32
    %c0_i32_1 = arith.constant 0 : i32
    return %c0_i32, %c0_i32_0 : i32, i32
  }
  func.func @transform_5(%arg0: i32) -> (i32, i32) {
    %c0_i32 = arith.constant 0 : i32
    %c0_i32_0 = arith.constant 0 : i32
    %c0_i32_1 = arith.constant 0 : i32
    return %c0_i32, %c0_i32_0 : i32, i32
  }
  func.func @transform_6(%arg0: i32) -> (i32, i32) {
    %c0_i32 = arith.constant 0 : i32
    %c0_i32_0 = arith.constant 0 : i32
    %c0_i32_1 = arith.constant 0 : i32
    return %c0_i32, %c0_i32_0 : i32, i32
  }
  func.func @transform_7(%arg0: i32) -> (i32, i32) {
    %c0_i32 = arith.constant 0 : i32
    %c0_i32_0 = arith.constant 0 : i32
    %c0_i32_1 = arith.constant 0 : i32
    return %c0_i32, %c0_i32_0 : i32, i32
  }
  func.func @transform_8(%arg0: i32) -> (i32, i32) {
    %c0_i32 = arith.constant 0 : i32
    %c0_i32_0 = arith.constant 0 : i32
    %c0_i32_1 = arith.constant 0 : i32
    return %c0_i32, %c0_i32_0 : i32, i32
  }
  func.func @transform_9(%arg0: i32) -> (i32, i32, i32) {
    %c0_i32 = arith.constant 0 : i32
    %c0_i32_0 = arith.constant 0 : i32
    %c0_i32_1 = arith.constant 0 : i32
    return %arg0, %c0_i32, %c0_i32_0 : i32, i32, i32
  }
}

</mosaic_0001>

<bundles_post_ra>
// kernel: output_layer_pallas.1
= control target key start
LH: loop header
LB: loop body
LE: loop exit
PB: predicated region body
PF: predicated region fallthrough
CT: control target
= control target key end

     0   :  { %s1001_s0 = inlined_call_operand.vmem [shape: f32[2,32,16], index: 0, kind: input, shape index: {}]   ;;  %s1002_s1 = inlined_call_operand.vmem [shape: f32[8,32], index: 1, kind: input, shape index: {}]   ;;  %s1003_s2 = inlined_call_operand.vmem [shape: f32[8,1], index: 2, kind: input, shape index: {}]   ;;  %s1004_s3 = inlined_call_operand.vmem [shape: f32[4,16], index: 3, kind: input, shape index: {}]   ;;  %s1005_s4 = inlined_call_operand.vmem [shape: f32[4,16], index: 4, kind: input, shape index: {}]   ;;  %s1006_s5 = inlined_call_operand.vmem [shape: f32[4,4], index: 5, kind: input, shape index: {}]   ;;  %s1007_s6 = inlined_call_operand.vmem [shape: f32[4,1], index: 6, kind: input, shape index: {}]   ;;  %s1008_s7 = inlined_call_operand.vmem [shape: f32[4,1], index: 7, kind: input, shape index: {}]   ;;  %s1009_s8 = inlined_call_operand.<no memory space> [shape: f32[1,1], index: 8, kind: input, shape index: {}]   ;;  %s1010_s9 = inlined_call_operand.hbm [shape: f32[2,1,16], index: 9, kind: output, shape index: {}]  }
   0x1   :  { %v14_v0 = vstv %s1009_s8 }
   0x2   :  { %15 = vst [vmem:[#allocation2] sm:$0x1] %v14_v0 }
   0x3   :  { %16 = vsyncpa [#allocation4], 0 }
   0x4   :  { %18 = vsyncpa [#allocation4 + $0x1], 0  ;;  %s877_s11 = smov 0   ;;  %s879_s12 = smov 0  }
   0x5   :  { %s881_s13 = smov 0   ;;  %s883_s14 = smov 0  }
   0x6 LB: > { %s898_s8 = sadd.s32 4294967295, %s817_s14   ;;  %s650_s15 = sadd.s32 4294967294, %s817_s14   ;;  %s817_s14 = sphi %s883_s14, %s1016_s14   ;;  %s813_s13 = sphi %s881_s13, %s1015_s13   ;;  %s809_s12 = sphi %s879_s12, %s1014_s12   ;;  %s805_s11 = sphi %s877_s11, %s1013_s11  }
   0x7   : > { %s902_s16 = sadd.s32 1, %s817_s14   ;;  %s225_s17 = sadd.s32 1, %s813_s13 }
   0x8   : > { %s222_s18 = ssub.s32 %s817_s14, %s902_s16  ;;  %p235_p0 = scmp.ne.s32.totalorder %s813_s13, %s809_s12 }
   0x9   : > { %p223_p1 = scmp.eq.s32.totalorder %s222_s18, 0  ;;  %p236_p2 = scmp.eq.s32.totalorder %s898_s8, 1 }
   0xa   : > { %p241_p3 = scmp.ne.s32.totalorder %s809_s12, %s805_s11  ;;  %p242_p4 = scmp.eq.s32.totalorder %s650_s15, 1 }
   0xb   : > { %s913_s19 = scalar_select %p223_p1, %s813_s13, %s225_s17  }
   0xc   : > { %p915_p5 = por %p236_p2, %p235_p0  ;;  %p919_p6 = por %p242_p4, %p241_p3 }
   0xd   : > { %p653_p7 = scmp.ge.s32.totalorder %s817_s14, 1  ;;  %p292_p8 = scmp.lt.s32.totalorder %s817_s14, 3 }
   0xf   : > { %p293_p9 = pnand %p653_p7, %p292_p8 }
  0x10   : > { %p327_p10 = scmp.lt.s32.totalorder (!%p293_p9), %s898_s8, 1  ;;  %v819_v1 = vmov (!%p293_p9), 0.0|0.0   ;;  %vm820_vm0 = vmmov (!%p293_p9), 0   ;;  %v821_v2 = vmov (!%p293_p9), 0.0   ;;  %v333_v3 = vld [vmem:[%s1003_s2] sm:$0xff] (!%p293_p9)  ;;  %v822_v4 = vmov (!%p293_p9), 0  }
  0x11   : > { %296 = sbr.rel (%p293_p9) target bundleno = 1046 (0x416), region = 56  ;;  %688 = vmatprep.subr.bf16.mxu0 (!%p293_p9), %v819_v1  ;;  %680 = vmatprep.mubr.msk.f32.mxu0 (!%p293_p9), %vm820_vm0, %v821_v2  ;;  %v332_v11 = vld [vmem:[%s1002_s1] sm:$0xff] (!%p293_p9)  ;;  %vm349_vm1 = vcmask (!%p293_p9), 261120   ;;  %vm433_vm2 = vcmask (!%p293_p9), 125952   ;;  %vm476_vm3 = vcmask (!%p293_p9), 1043456   ;;  %vm472_vm4 = vcmask (!%p293_p9), 31744  }
  0x12   : > { %743 = vset.pattern.permute.xlu0 (!%p293_p9), %v822_v4  ;;  %683 = vmatprep.subr.mxu1 (!%p293_p9), %v821_v2  ;;  %v337_v40 = vld [vmem:[%s1007_s6] sm:$0xf] (!%p293_p9)  ;;  %v575_v0 = vlaneseq (!%p293_p9)  ;;  %s325_s18 = sand.u32 (!%p293_p9), 1, %s809_s12   ;;  %s661_s22 = sshll.u32 (!%p293_p9), %s898_s8, 4  ;;  %vm580_vm5 = vcmask (!%p293_p9), 122880  }
  0x13   : > { %346 = vperm.xlu0 (!%p293_p9), %743, %v333_v3   ;;  %685 = vmatprep.mubr.msk.f32.mxu1 (!%p293_p9), %vm820_vm0, %v821_v2  ;;  %v338_v42 = vld [vmem:[%s1008_s7] sm:$0xf] (!%p293_p9)  ;;  %s326_s23 = scalar_lea.vmem (!%p293_p9), [#allocation3], %s325_s18 }
  0x14   : > { %744 = vset.pattern.permute.xlu1 (!%p293_p9), %v822_v4  ;;  %v339_v43 = vld [vmem:[#allocation2] sm:$0x1] (!%p293_p9)  ;;  %v576_v4 = vshrl.u32 (!%p293_p9), %v575_v0, 7 }
  0x15   : > { %v334_v46 = vld [vmem:[%s1004_s3] sm:$0xf] (!%p293_p9) }
  0x16   : > { %v335_v49 = vld [vmem:[%s1005_s4] sm:$0xf] (!%p293_p9) }
  0x17   : > { %v336_v52 = vld [vmem:[%s1006_s5] sm:$0xf] (!%p293_p9) }
  0x18   : > { %s328_s24 = scalar_select %p327_p10, %s898_s8, 1 }
  0x19   : > { %s823_s8 = smov [#allocation3]  }
  0x1a   : > { %s664_s25 = sshll.u32 %s328_s24, 5  ;;  %s759_s30 = sshll.u32 %s823_s8, 4  ;;  %s760_s30 = int_to_ptr.vmem [resolvable:$false] %s759_s30 }
  0x1b   : > { %s331_s28 = scalar_lea.vmem %s1001_s0, %s664_s25 }
  0x1c   : > { %v340_v5 = vld [vmem:[%s331_s28] sm:$0xff]  ;;  %v341_v6 = vld [vmem:[%s331_s28 + $0x8] sm:$0xff]  ;;  %v342_v7 = vld [vmem:[%s331_s28 + $0x10] sm:$0xff] }
  0x1d   : > { %v689_v8 = vpack.c.bf16 %v341_v6, %v340_v5  ;;  %v343_v9 = vld [vmem:[%s331_s28 + $0x18] sm:$0xff]  ;;  %s583_s28 = scalar_lea.sflag [#allocation4], %s325_s18 }
  0x1e   : > { %v692_v10 = vpack.c.bf16 %v343_v9, %v342_v7  ;;  %v577_v7 = vsub.s32 0, %v576_v4 }
  0x1f   : > { %690 = vmatpush3.bf16.msra.mxu0 %v689_v8 }
  0x20   : > { %691 = vmatprep.subr.bf16.mxu0 %v819_v1 }
  0x23   : > { %693 = vmatpush3.bf16.msra.mxu0 %v692_v10 }
  0x26   : > { %681 = vmatmul.mubr.msk.f32.vlgmr.msra.gmra.mrb[0].mxu0 %vm349_vm1, %v332_v11 }
  0x92   : > { %v347_v12 = vpop.permute.xlu0 %346 }
  0xf9   : > { %v419_v13 = vpop.f32.mrb[0].mxu0 }
  0xfa   : > { %v420_v14 = vadd.f32 %v419_v13, %v347_v12  ;;  %v682_v15 = vpop.f32.mrb[1].mxu0 }
  0xfc   : > { %v657_v16 = vmul.f32 -1.442695, %v420_v14 }
  0xfe   : > { %745 = vpow2.f32 %v657_v16 }
 0x108   : > { %v746_v17 = vpop.eup %745 }
 0x109   : > { %v426_v18 = vadd.f32 1.0, %v746_v17 }
 0x10b   : > { %747 = vrcp.f32 %v426_v18 }
 0x115   : > { %v748_v19 = vpop.eup %747 }
 0x116   : > { %v430_v20 = vrot.slane %v748_v19, 4 }
 0x118   : > { %v432_v21 = vmul.f32 %v430_v20, %v420_v14 }
 0x11a   : > { %v434_v22 = vsel %vm433_vm2, %v432_v21, 0.0 }
 0x11b   : > { %435 = vadd.xlane.f32.xlu0 %v434_v22 }
 0x1a8   : > { %v436_v23 = vpop.xlane.xlu0 %435 }
 0x1a9   : > { %v437_v24 = vrot.slane %v436_v23, 4 }
 0x1ab   : > { %v438_v25 = vadd.f32 %v437_v24, %v436_v23 }
 0x1ad   : > { %v439_v26 = vrot.slane %v438_v25, 2 }
 0x1af   : > { %v440_v27 = vadd.f32 %v439_v26, %v438_v25 }
 0x1b1   : > { %v441_v28 = vrot.slane %v440_v27, 1 }
 0x1b3   : > { %v442_v29 = vadd.f32 %v441_v28, %v440_v27 }
 0x1b5   : > { %694 = vpush %v442_v29 }
 0x1e6   : > { %s695_s10 = spop %694 }
 0x1e7   : > { %s444_s15 = smul.f32 0.015625, %s695_s10  ;;  %s761_s10 = scalar_lea.vmem %s760_s30, 32 }
 0x1e9   : > { %v445_v30 = vstv %s444_s15 }
 0x1ea   : > { %v446_v31 = vsub.f32 %v432_v21, %v445_v30 }
 0x1ec   : > { %v447_v32 = vmul.f32 %v446_v31, %v446_v31 }
 0x1ee   : > { %v448_v33 = vsel %vm433_vm2, %v447_v32, 0.0 }
 0x1ef   : > { %449 = vadd.xlane.f32.xlu1 %v448_v33 }
 0x200   : > { %469 = vperm.xlu1 %744, %v337_v40  }
 0x204   : > { %559 = vperm.xlu1 %744, %v338_v42  }
 0x208   : > { %572 = vperm.xlu1 %744, %v339_v43  }
 0x27c   : > { %v450_v34 = vpop.xlane.xlu1 %449 }
 0x27d   : > { %v451_v35 = vrot.slane %v450_v34, 4 }
 0x27f   : > { %v452_v36 = vadd.f32 %v451_v35, %v450_v34 }
 0x280   : > { %v470_v53 = vpop.permute.xlu1 %469 }
 0x281   : > { %v453_v37 = vrot.slane %v452_v36, 2 }
 0x283   : > { %v454_v38 = vadd.f32 %v453_v37, %v452_v36 }
 0x284   : > { %v560_v62 = vpop.permute.xlu1 %559 }
 0x285   : > { %v455_v39 = vrot.slane %v454_v38, 1 }
 0x287   : > { %v456_v41 = vadd.f32 %v455_v39, %v454_v38 }
 0x288   : > { %v573_v8 = vpop.permute.xlu1 %572 }
 0x289   : > { %696 = vpush %v456_v41  ;;  %v578_v11 = vrot.slane %v573_v8, %v577_v7 }
 0x2ba   : > { %s697_s24 = spop %696 }
 0x2bb   : > { %s458_s25 = smul.f32 0.015625, %s697_s24  ;;  %s595_s24 = sshll.u32 %s326_s23, 4  ;;  %s961_s24 = int_to_ptr.vmem [resolvable:$true] %s595_s24 }
 0x2bc   : > { %s755_s29 = scalar_lea.vmem %s961_s24, 16  ;;  %p762_p0 = scmp.lt.s32.totalorder %s961_s24, %s760_s30 }
 0x2bd   : > { %s459_s26 = sadd.f32 1e-05, %s458_s25  ;;  %p756_p11 = scmp.ne.s32.totalorder %s961_s24, %s755_s29 }
 0x2be   : > { %p763_p1 = scmp.lt.s32.totalorder %s761_s10, %s755_s29 }
 0x2bf   : > { %v460_v44 = vstv %s459_s26  ;;  %p757_p12 = pnand %p756_p11, %p915_p5 }
 0x2c0   : > { %749 = vrsqrt.f32 %v460_v44  ;;  %p764_p2 = por %p763_p1, %p762_p0 }
 0x2c1   : > { %p758_p13 = pneg %p757_p12 }
 0x2c3   : > { %p765_p3 = pnand %p764_p2, %p758_p13 }
 0x2ca   : > { %v750_v45 = vpop.eup %749 }
 0x2cb   : > { %698 = vpush %v750_v45 }
 0x2fc   : > { %s699_s27 = spop %698 }
 0x2fd   : > { %v463_v47 = vstv %s699_s27  ;;  %s959_s27 = scalar_lea.hbm %s1010_s9, %s661_s22 }
 0x2fe   : > { %v464_v48 = vmul.f32 %v463_v47, %v446_v31 }
 0x300   : > { %v465_v50 = vmul.f32 %v464_v48, %v334_v46 }
 0x302   : > { %v466_v51 = vadd.f32 %v465_v50, %v335_v49 }
 0x304   : > { %684 = vmatpush3.msk.msra.mxu1 %vm476_vm3, %v466_v51 }
 0x305   : > { %686 = vmatmul.mubr.msk.f32.vlgmr.msra.gmra.mrb[0].mxu1 %vm472_vm4, %v336_v52 }
 0x3d8   : > { %v546_v54 = vpop.f32.mrb[0].mxu1 }
 0x3d9   : > { %v547_v55 = vadd.f32 %v546_v54, %v470_v53  ;;  %v687_v56 = vpop.f32.mrb[1].mxu1 }
 0x3db   : > { %v550_v57 = vadd.f32 %v547_v55, %v466_v51 }
 0x3dd   : > { %v660_v58 = vmul.f32 -1.442695, %v550_v57 }
 0x3df   : > { %751 = vpow2.f32 %v660_v58 }
 0x3e9   : > { %v752_v59 = vpop.eup %751 }
 0x3ea   : > { %v554_v60 = vadd.f32 1.0, %v752_v59 }
 0x3ec   : > { %753 = vrcp.f32 %v554_v60 }
 0x3f6   : > { %v754_v61 = vpop.eup %753 }
 0x3f7   : > { %v562_v63 = vmul.f32 %v754_v61, %v560_v62 }
 0x3f9   : > { %v563_v1 = vsel %vm433_vm2, %v562_v63, 0.0 }
 0x3fa   : > { %v564_v2 = vrot.slane %v563_v1, 4 }
 0x3fc   : > { %v565_v3 = vadd.f32 %v564_v2, %v563_v1 }
 0x3fe   : > { %v566_v5 = vrot.slane %v565_v3, 2 }
 0x400   : > { %v567_v6 = vadd.f32 %v566_v5, %v565_v3 }
 0x402   : > { %v568_v9 = vrot.slane %v567_v6, 1 }
 0x404   : > { %v569_v10 = vadd.f32 %v568_v9, %v567_v6 }
 0x406   : > { %v579_v12 = vadd.f32 %v578_v11, %v569_v10 }
 0x408   : > { %581 = vst.msk [vmem:[%s326_s23] sm:$0x1] %vm580_vm5, %v579_v12 }
 0x409   : > { %768 = shalt.err (!%p765_p3)
}
 0x40a   : > { %s769_s15 = scalar_lea.hbm %s959_s27, 16  ;;  %s773_s22 = scalar_lea.hbm %s1010_s9, 32 }
 0x40b   : > { %p770_p4 = scmp.ne.s32.totalorder %s959_s27, %s769_s15  ;;  %p774_p9 = scmp.lt.u32.totalorder %s959_s27, %s1010_s9 }
 0x40c   : > { %p775_p10 = scmp.lt.u32.totalorder %s773_s22, %s769_s15  ;;  %p777_p12 = scmp.lt.u32.totalorder %s769_s15, %s959_s27 }
 0x40d   : > { %p771_p7 = pnand %p770_p4, %p915_p5 }
 0x40e   : > { %p776_p11 = por %p775_p10, %p774_p9 }
 0x40f   : > { %p772_p8 = pneg %p771_p7 }
 0x410   : > { %p778_p13 = por %p777_p12, %p776_p11 }
 0x412   : > { %p779_p0 = pnand %p778_p13, %p772_p8 }
 0x414   : > { %782 = shalt.err (!%p779_p0)
}
 0x415   : > { %700 = dma.vmem_to_hbm [thread:$0]  (%p915_p5), %s961_s24, 16, %s959_s27, %s583_s28  }
 0x416 PF: > { %p706_p1 = scmp.ge.s32.totalorder %s817_s14, 2  ;;  %s607_s26 = sand.u32 1, %s805_s11  }
 0x417   : > { %s608_s29 = scalar_lea.sflag [#allocation4], %s607_s26 }
 0x418   : > { %p703_p2 = pnand %p706_p1, %p919_p6 }
 0x41a   : > { %800 = dma.done.wait (!%p703_p2), %s608_s29, 16  }
 0x41b   : > { %802 = vsyncadd (!%p703_p2), %s608_s29, 4294967280  ;;  %p21_p3 = scmp.ge.s32.totalorder %s902_s16, 4   ;;  %s1013_s11 = smov %s809_s12 }
 0x41c   : > { %s1014_s12 = smov %s813_s13  ;;  %s1015_s13 = smov %s913_s19 }
 0x41d   : > { %s1016_s14 = smov %s902_s16  ;;  %23 = sbr.rel (!%p21_p3) target bundleno = 6 (0x6), region = 91 }
 0x424   :  { %612 = vsyncpa [#allocation4], 1 }
 0x425   :  { %614 = vsyncpa [#allocation4 + $0x1], 1 }

</bundles_post_ra>
